<compile_context>
chip_gen: v7x
topology: tpu7x:2x2x1
jax: 0.10.0
libtpu: 0.0.40
codegen_flags: <defaults>
</compile_context>

<pallas_src>
import functools

import jax
import jax.numpy as jnp
from jax.experimental import pallas as pl
from jax.experimental.pallas import tpu as pltpu

EPS = 1e-4
ALPHA = 1.0 / 0.5 ** 2      # exp-kernel argument after the 1/sigma^2 transform


def _round_up(x, m):
    return ((x + m - 1) // m) * m


def _mosaic_params(dimension_semantics):
    """CompilerParams with a per-generation VMEM budget (best-effort)."""
    kwargs = dict(dimension_semantics=dimension_semantics)
    try:
        cap = pltpu.get_tpu_info().vmem_capacity_bytes
        # ~75% of reported VMEM: ~96 MiB on v5e/v6e, ~48 MiB on v7x.
        kwargs["vmem_limit_bytes"] = (int(cap) * 3) // 4
    except Exception:
        pass  # leave the compiler's scoped default
    return pltpu.CompilerParams(**kwargs)


# ---------------------------------------------------------------------------
# Kernel A: cosine projection (tensordot + norm-divide), node-tiled.
#   out[n, m] = sum_d x[n, d] * w[m, d] / max(||x[n]||, EPS)
#   Also emits per-node norms (needed later by the anonymous branch).
#   Output width is lane-padded to a multiple of 128 -> unmasked stores.
# ---------------------------------------------------------------------------
def _proj_kernel(x_ref, wt_ref, out_ref, norm_ref):
    x = x_ref[...]
    nrm = jnp.sqrt(jnp.sum(x * x, axis=-1, keepdims=True))
    norm_ref[...] = nrm
    # wt is pre-transposed + lane-padded (d, m_pad): keeps RHS in (K, N) MXU
    # layout, no in-kernel transpose, dense 128-multiple output stores.
    y = jax.lax.dot_general(x, wt_ref[...], (((1,), (0,)), ((), ())),
                            preferred_element_type=jnp.float32)
    # EUP reciprocal instead of a VPU divide sequence.
    out_ref[...] = y * pl.reciprocal(jnp.maximum(nrm, EPS), approx=True)


def projection(x, w_flat, *, tile_n=512):
    n, d = x.shape
    m = w_flat.shape[0]
    m_pad = _round_up(max(m, 128), 128)
    # transpose + zero lane-pad once in XLA
    wt = jnp.zeros((d, m_pad), jnp.float32).at[:, :m].set(jnp.transpose(w_flat))
    tile_n = min(tile_n, _round_up(n, 8))
    n_pad = _round_up(n, tile_n)
    if n_pad != n:
        x = jnp.pad(x, ((0, n_pad - n), (0, 0)))
    proj, norms = pl.pallas_call(
        _proj_kernel,
        out_shape=(jax.ShapeDtypeStruct((n_pad, m_pad), jnp.float32),
                   jax.ShapeDtypeStruct((n_pad, 1), jnp.float32)),
        grid=(n_pad // tile_n,),
        in_specs=[pl.BlockSpec((tile_n, d), lambda i: (i, 0)),
                  pl.BlockSpec((d, m_pad), lambda i: (0, 0))],   # resident weight
        out_specs=(pl.BlockSpec((tile_n, m_pad), lambda i: (i, 0)),
                   pl.BlockSpec((tile_n, 1), lambda i: (i, 0))),
        compiler_params=_mosaic_params(("parallel",)),
    )(x, wt)
    return proj[:n, :m], norms[:n]


# ---------------------------------------------------------------------------
# lintrans Gram:  kappa( mean_p  W_p @ W_p^T )  -- plain jnp (tiny matrix that
# feeds jnp.linalg.eigh; a pallas_call dispatch would cost more than the math).
# ---------------------------------------------------------------------------
def lintrans_gram(weight):
    p = weight.shape[0]
    g = jnp.einsum("pij,pkj->ik", weight, weight,
                   preferred_element_type=jnp.float32) / p
    return jnp.exp(ALPHA * (g - 1.0))


# ---------------------------------------------------------------------------
# Kernel B: path_conv_agg + norm rescale + lintrans matmul (anonymous branch).
# The walk gather is done in XLA; the kernel receives, per node tile, a dense
# (walks*plen, tile_n, h) slab where row (w*plen + j) holds
# proj[walk_idx[node*walks + w, j], j, :] for every node in the tile.
# Everything inside is full-slab vector work:
#   path conv (mean over plen)  -> kappa exp over (tile_n, h) slabs
#   -> mean over walks -> norm rescale -> one (tile_n,h)x(h,h_pad) matmul
#   -> lane-dense (tile_n, 128k) store.
# ---------------------------------------------------------------------------
def _path_agg_kernel(emb_ref, norm_ref, lin_t_ref, out_ref, *, walks, plen):
    tile_n = out_ref.shape[0]
    h = emb_ref.shape[-1]
    inv_plen = 1.0 / plen
    inv_walks = 1.0 / walks

    acc = jnp.zeros((tile_n, h), jnp.float32)
    for w in range(walks):                       # small static unroll, full slabs
        s = jnp.zeros((tile_n, h), jnp.float32)
        for j in range(plen):
            s = s + emb_ref[w * plen + j]        # (tile_n, h) dense slab load
        acc = acc + jnp.exp(ALPHA * (s * inv_plen - 1.0))   # kappa, batched
    pooled = (acc * inv_walks) * norm_ref[...]   # 'mean' pooling + norm rescale

    # torch.tensordot(output, lintrans, [[-1],[-1]]) == output @ lintrans.T;
    # lin_t is pre-transposed + lane-padded -> one matmul, unmasked store.
    out_ref[...] = jax.lax.dot_general(
        pooled, lin_t_ref[...], (((1,), (0,)), ((), ())),
        preferred_element_type=jnp.float32)


def path_conv_agg(proj_nph, walk_idx, norms, lintrans, *, walks, plen,
                  tile_n=256):
    n_nodes, _, h = proj_nph.shape
    tile_n = min(tile_n, _round_up(n_nodes, 8))
    n_pad = _round_up(n_nodes, tile_n)
    h_pad = _round_up(max(h, 128), 128)          # lane-dense output slab

    # --- XLA pre-gather (replaces the old per-row scalar gather loop) ------
    # gathered[p, j, :] = proj[walk_idx[p, j], j, :]
    idx = walk_idx.astype(jnp.int32)                           # (n*walks, plen)
    gathered = proj_nph[idx, jnp.arange(plen)[None, :], :]     # (n*walks, plen, h)
    # -> (walks*plen, n_nodes, h): leading axis = w*plen + j (walks for node n
    #    are rows n*walks .. (n+1)*walks-1 of walk_idx, i.e. contiguous).
    gathered = gathered.reshape(n_nodes, walks * plen, h).transpose(1, 0, 2)
    if n_pad != n_nodes:
        # zero-pad tail nodes; padded rows are finite garbage, sliced off below.
        gathered = jnp.pad(gathered, ((0, 0), (0, n_pad - n_nodes), (0, 0)))
        norms = jnp.pad(norms, ((0, n_pad - n_nodes), (0, 0)))
    # lintrans^T, zero-padded on the output/lane axis up to h_pad.
    lin_t = jnp.zeros((h, h_pad), jnp.float32).at[:, :h].set(lintrans.T)

    kernel = functools.partial(_path_agg_kernel, walks=walks, plen=plen)
    out = pl.pallas_call(
        kernel,
        out_shape=jax.ShapeDtypeStruct((n_pad, h_pad), jnp.float32),
        grid=(n_pad // tile_n,),
        in_specs=[
            # node-tiled gathered slab: (walks*plen, tile_n, h)
            pl.BlockSpec((walks * plen, tile_n, h), lambda t: (0, t, 0)),
            pl.BlockSpec((tile_n, 1), lambda t: (t, 0)),
            pl.BlockSpec((h, h_pad), lambda t: (0, 0)),        # resident lintrans
        ],
        out_specs=pl.BlockSpec((tile_n, h_pad), lambda t: (t, 0)),
        compiler_params=_mosaic_params(("parallel",)),   # node tiles independent
    )(gathered, norms, lin_t)
    return out[:n_nodes, :h]


# ---------------------------------------------------------------------------
# Plain-JAX glue (no clean Pallas equivalent / parameter setup)
# ---------------------------------------------------------------------------
def l2_normalize(w):
    nrm = jnp.linalg.norm(w, axis=-1, keepdims=True)
    return w / jnp.maximum(nrm, EPS)


def matrix_inverse_sqrt(k, eps=1e-2):
    # TODO(synk): ops.matrix_inverse_sqrt is a symeig-based custom Function;
    # forward semantics reproduced with jnp.linalg.eigh (no Pallas equivalent).
    e, v = jnp.linalg.eigh(k)
    inv_sqrt = 1.0 / (jnp.sqrt(jnp.maximum(e, 0.0)) + eps)
    return (v * inv_sqrt[None, :]) @ v.T


def _pca_transform(x, n_components):
    # sklearn.decomposition.PCA fit+transform (with u-based svd_flip sign fix).
    xc = x - jnp.mean(x, axis=0, keepdims=True)
    u, _, vt = jnp.linalg.svd(xc, full_matrices=False)
    max_rows = jnp.argmax(jnp.abs(u), axis=0)
    signs = jnp.sign(u[max_rows, jnp.arange(u.shape[1])])
    vt = vt * signs[:, None]
    return xc @ vt[:n_components].T


# ---------------------------------------------------------------------------
# PathLayer.forward
# ---------------------------------------------------------------------------
def path_layer_forward(features, paths_indices, anonymous_walks, params, cfg):
    path_size = cfg["path_size"]
    awl = cfg["anonymous_walk_length"]
    hidden = cfg["hidden_size"]
    walks = cfg["walks_per_node"]          # stands for other_info['n_paths']
    n_nodes = features.shape[0]

    # self.normalize_()
    weight = l2_normalize(params["weight"])                # (path_size, H, D)
    weight_anonym = l2_normalize(params["weight_anonym"])  # (awl, H, Dfa)

    # --- conv_pred(flag_anonymous=False):
    # with aggregation=False the branch reduces to the norm-divided projection,
    # viewed as (n_nodes, path_size, hidden). paths_indices is unused here,
    # faithful to the reference code path.
    w_flat = weight.reshape(path_size * hidden, -1)
    proj, _ = projection(features.astype(jnp.float32), w_flat)
    output = proj.reshape(n_nodes, path_size, hidden)
    del paths_indices

    # --- PCA on anonymous walks (sklearn PCA replaced by plain-JAX SVD) ---
    feats_anon = _pca_transform(
        anonymous_walks.reshape(n_nodes, -1).astype(jnp.float32), awl)

    # --- conv_pred(flag_anonymous=True) ---
    wa_flat = weight_anonym.reshape(awl * hidden, -1)
    proj_a, norms_a = projection(feats_anon, wa_flat)
    proj_a = proj_a.reshape(n_nodes, awl, hidden)
    lint = matrix_inverse_sqrt(lintrans_gram(weight_anonym))
    out_anon = path_conv_agg(proj_a, anonymous_walks, norms_a, lint,
                             walks=walks, plen=awl)          # (n_nodes, hidden)

    # torch.cat((output, output_anonymous), 1)
    # TODO(synk): the reference cat mixes a 3-D and a 2-D tensor; we lift the
    # anonymous output to (n_nodes, 1, hidden) and concatenate on axis 1.
    return jnp.concatenate([output, out_anon[:, None, :]], axis=1)


if __name__ == "__main__":
    key = jax.random.PRNGKey(0)
    N, D, H = 16, 8, 32          # n_nodes, input_size, hidden_size
    path_size = 1                # module default
    awl = 5                      # anonymous_walk_length
    fad = 5                      # features_anonymous_dim (== awl, as in defaults)
    W = 3                        # anonymous walks per node (other_info['n_paths'])

    k1, k2, k3, k4, k5 = jax.random.split(key, 5)
    stdv = 1.0 / (H ** 0.5)
    weight = jax.random.uniform(k1, (path_size, H, D), jnp.float32, -stdv, stdv)
    weight_anonym = jax.random.uniform(k2, (awl, H, fad), jnp.float32, -stdv, stdv)

    features = jax.random.normal(k3, (N, D), jnp.float32)
    anonymous_walks = jax.random.randint(k4, (N * W, awl), 0, N, jnp.int32)
    paths_indices = [jax.random.randint(k5, (N * W, 1), 0, N, jnp.int32)]

    params = dict(weight=weight, weight_anonym=weight_anonym)
    cfg = dict(path_size=path_size, hidden_size=H,
               anonymous_walk_length=awl, walks_per_node=W)

    out = path_layer_forward(features, paths_indices, anonymous_walks,
                             params, cfg)
    out = jax.block_until_ready(out)
    assert out.shape == (N, path_size + 1, H), out.shape
    assert bool(jnp.all(jnp.isfinite(out)))
    print("KERNEL_OK")
</pallas_src>

<mosaic_0001>
module attributes {stable_mosaic.version = 11 : i64} {
  func.func @_proj_kernel(%arg0: i32, %arg1: memref<16x8xf32, #tpu.memory_space<vmem>>, %arg2: memref<8x128xf32, #tpu.memory_space<vmem>>, %arg3: memref<16x128xf32, #tpu.memory_space<vmem>>, %arg4: memref<16x1xf32, #tpu.memory_space<vmem>>) attributes {dimension_semantics = [#tpu.dimension_semantics<parallel>], iteration_bounds = array<i64: 1>, scalar_prefetch = 0 : i64, scratch_operands = 0 : i64, tpu.core_type = #tpu.core_type<tc>, window_params = [{transform_indices = @transform_0, window_bounds = array<i64: 16, 8>}, {pipeline_mode = #tpu.pipeline_mode<synchronous>, transform_indices = @transform_1, window_bounds = array<i64: 8, 128>}, {transform_indices = @transform_2, window_bounds = array<i64: 16, 128>}, {transform_indices = @transform_3, window_bounds = array<i64: 16, 1>}]} {
    %c0 = arith.constant 0 : index
    %c0_0 = arith.constant 0 : index
    %0 = vector.load %arg1[%c0, %c0_0] : memref<16x8xf32, #tpu.memory_space<vmem>>, vector<16x8xf32>
    %1 = arith.mulf %0, %0 : vector<16x8xf32>
    %cst = arith.constant dense<0.000000e+00> : vector<16xf32>
    %2 = vector.multi_reduction <add>, %1, %cst [1] : vector<16x8xf32> to vector<16xf32>
    %3 = vector.shape_cast %2 : vector<16xf32> to vector<16x1xf32>
    %4 = math.sqrt %3 : vector<16x1xf32>
    %c0_1 = arith.constant 0 : index
    %c0_2 = arith.constant 0 : index
    %5 = vector.load %arg4[%c0_1, %c0_2] : memref<16x1xf32, #tpu.memory_space<vmem>>, vector<16x1xf32>
    tpu.vector_store %arg4[%c0_1, %c0_2], %4 {strides = array<i32>} : memref<16x1xf32, #tpu.memory_space<vmem>>, vector<16x1xf32>,
    %c0_3 = arith.constant 0 : index
    %c0_4 = arith.constant 0 : index
    %6 = vector.load %arg2[%c0_3, %c0_4] : memref<8x128xf32, #tpu.memory_space<vmem>>, vector<8x128xf32>
    %cst_5 = arith.constant dense<0.000000e+00> : vector<16x128xf32>
    %7 = tpu.matmul %0, %6, %cst_5 {dimension_numbers = #tpu.dot_dimension_numbers<[1], [0], [0], [1], [0, 0, 1, 1], [], []>} : vector<16x8xf32>, vector<8x128xf32>, vector<16x128xf32> -> vector<16x128xf32>
    %cst_6 = arith.constant 9.99999974E-5 : f32
    %8 = vector.broadcast %cst_6 : f32 to vector<16x1xf32>
    %9 = arith.maximumf %4, %8 : vector<16x1xf32>
    %10 = tpu.reciprocal %9 {approx = true} : vector<16x1xf32> -> vector<16x1xf32>
    %11 = vector.broadcast %10 : vector<16x1xf32> to vector<16x128xf32>
    %12 = arith.mulf %7, %11 : vector<16x128xf32>
    %c0_7 = arith.constant 0 : index
    %c0_8 = arith.constant 0 : index
    %13 = vector.load %arg3[%c0_7, %c0_8] : memref<16x128xf32, #tpu.memory_space<vmem>>, vector<16x128xf32>
    tpu.vector_store %arg3[%c0_7, %c0_8], %12 {strides = array<i32>} : memref<16x128xf32, #tpu.memory_space<vmem>>, vector<16x128xf32>,
    return
  }
  func.func @transform_0(%arg0: i32) -> (i32, i32) {
    %c0_i32 = arith.constant 0 : i32
    %c0_i32_0 = arith.constant 0 : i32
    return %arg0, %c0_i32 : i32, i32
  }
  func.func @transform_1(%arg0: i32) -> (i32, i32) {
    %c0_i32 = arith.constant 0 : i32
    %c0_i32_0 = arith.constant 0 : i32
    %c0_i32_1 = arith.constant 0 : i32
    return %c0_i32, %c0_i32_0 : i32, i32
  }
  func.func @transform_2(%arg0: i32) -> (i32, i32) {
    %c0_i32 = arith.constant 0 : i32
    %c0_i32_0 = arith.constant 0 : i32
    return %arg0, %c0_i32 : i32, i32
  }
  func.func @transform_3(%arg0: i32) -> (i32, i32) {
    %c0_i32 = arith.constant 0 : i32
    %c0_i32_0 = arith.constant 0 : i32
    return %arg0, %c0_i32 : i32, i32
  }
}

</mosaic_0001>

<bundles_post_ra>
// kernel: tpu_custom_call.1
= control target key start
LH: loop header
LB: loop body
LE: loop exit
PB: predicated region body
PF: predicated region fallthrough
CT: control target
= control target key end

     0   :  { %vm18_vm0 = vcmask 64512   ;;  %s247_s0 = inlined_call_operand.vmem [shape: f32[16,8], index: 0, kind: input, shape index: {}]   ;;  %s248_s1 = inlined_call_operand.vmem [shape: f32[8,128], index: 1, kind: input, shape index: {}]   ;;  %s249_s2 = inlined_call_operand.hbm [shape: f32[16,128], index: 2, kind: output, shape index: {0}]   ;;  %s250_s3 = inlined_call_operand.vmem [shape: f32[16,1], index: 3, kind: output, shape index: {1}]  }
   0x1   :  { %v42_v0 = vld [vmem:[%s248_s1] sm:$0xff]  ;;  %v15_v2 = vld [vmem:[%s247_s0 + $0x8] sm:$0xff] }
   0x2   :  { %v14_v1 = vld [vmem:[%s247_s0] sm:$0xff]  ;;  %157 = vmatprep.subr.mxu0 %v42_v0  ;;  %v17_v4 = vmul.f32 %v15_v2, %v15_v2 }
   0x3   :  { %v16_v3 = vmul.f32 %v14_v1, %v14_v1  ;;  %159 = vmatprep.mubr.msk.f32.mxu0 %vm18_vm0, %v14_v1 }
   0x4   :  { %9 = vsyncpa [#allocation3], 0  ;;  %158 = vmatpush3.msra.mxu0 %v42_v0  ;;  %v22_v6 = vsel %vm18_vm0, %v17_v4, 0.0  ;;  %vm39_vm3 = vcmask 7168   ;;  %s197_s20 = smov [#allocation2]  }
   0x5   :  { %160 = vmatmul.mubr.msk.f32.vlgmr.msra.gmra.mrb[0].mxu0 %vm18_vm0, %v15_v2  ;;  %v19_v5 = vsel %vm18_vm0, %v16_v3, 0.0  ;;  %s137_s21 = sshll.u32 %s197_s20, 4  ;;  %s138_s21 = int_to_ptr.vmem [resolvable:$true] %s137_s21 }
   0x6   :  { %20 = vadd.xlane.f32.xlu0 %v19_v5  ;;  %s173_s22 = scalar_lea.vmem %s138_s21, 256  ;;  %p178_p1 = scmp.lt.s32.totalorder %s138_s21, %s138_s21 }
   0x7   :  { %p174_p0 = scmp.ne.s32.totalorder %s138_s21, %s173_s22  ;;  %p179_p2 = scmp.lt.s32.totalorder %s173_s22, %s173_s22 }
   0x9   :  { %p180_p3 = por %p179_p2, %p178_p1 }
   0xa   :  { %23 = vadd.xlane.f32.xlu0 %v22_v6 }
   0xb   :  { %p181_p4 = pnand %p180_p3, %p174_p0 }
  0x93   :  { %v21_v7 = vpop.xlane.xlu0 %20 }
  0x94   :  { %165 = vrsqrt.f32 %v21_v7  ;;  %vm27_vm1 = vcmp.eq.f32.partialorder %v21_v7, inf  ;;  %v30_v10 = vand.u32 2147483648, %v21_v7  ;;  %vm29_vm2 = vcmp.eq.f32.partialorder %v21_v7, 0.0 }
  0x97   :  { %v24_v8 = vpop.xlane.xlu0 %23 }
  0x98   :  { %167 = vrsqrt.f32 %v24_v8  ;;  %vm34_vm4 = vcmp.eq.f32.partialorder %v24_v8, inf  ;;  %v37_v14 = vand.u32 2147483648, %v24_v8  ;;  %vm36_vm5 = vcmp.eq.f32.partialorder %v24_v8, 0.0 }
  0x9e   :  { %v166_v9 = vpop.eup %165 }
  0x9f   :  { %v26_v11 = vmul.f32 %v166_v9, %v21_v7 }
  0xa1   :  { %v28_v12 = vsel %vm27_vm1, %v21_v7, %v26_v11 }
  0xa2   :  { %v168_v13 = vpop.eup %167  ;;  %v31_v15 = vsel %vm29_vm2, %v30_v10, %v28_v12 }
  0xa3   :  { %v33_v16 = vmul.f32 %v168_v13, %v24_v8  ;;  %40 = vst.msk [vmem:[%s250_s3] sm:$0xff] %vm39_vm3, %v31_v15  ;;  %v124_v20 = vmax.f32 %v31_v15, 0.0001 }
  0xa5   :  { %v35_v17 = vsel %vm34_vm4, %v24_v8, %v33_v16 }
  0xa6   :  { %v38_v18 = vsel %vm36_vm5, %v37_v14, %v35_v17 }
  0xa7   :  { %41 = vst.msk [vmem:[%s250_s3 + $0x8] sm:$0xff] %vm39_vm3, %v38_v18  ;;  %v125_v19 = vmax.f32 %v38_v18, 0.0001 }
  0xa9   :  { %169 = vrcp.f32 %v125_v19 }
  0xaa   :  { %171 = vrcp.f32 %v124_v20 }
  0xb3   :  { %v170_v21 = vpop.eup %169 }
  0xb4   :  { %v172_v23 = vpop.eup %171 }
  0xd8   :  { %v161_v22 = vpop.f32.mrb[0].mxu0 }
  0xd9   :  { %v129_v24 = vmul.f32 %v170_v21, %v161_v22  ;;  %v115_v25 = vpop.f32.mrb[1].mxu0 }
  0xda   :  { %v128_v26 = vmul.f32 %v172_v23, %v115_v25 }
  0xdb   :  { %131 = vst [vmem:[#allocation2 + $0x8] sm:$0xff] %v129_v24 }
  0xdc   :  { %130 = vst [vmem:[#allocation2] sm:$0xff] %v128_v26 }
  0xdd   :  { %184 = shalt.err (!%p181_p4)
}
  0xde   :  { %s185_s24 = scalar_lea.hbm %s249_s2, 256 }
  0xdf   :  { %p186_p5 = scmp.ne.s32.totalorder %s249_s2, %s185_s24  ;;  %p189_p6 = scmp.lt.u32.totalorder %s185_s24, %s249_s2 }
  0xe1   :  { %p191_p7 = pnand %p189_p6, %p186_p5 }
  0xe3   :  { %194 = shalt.err (!%p191_p7)
}
  0xe4   :  { %s198_s29 = smov 128   ;;  %s199_s30 = smov 8  }
  0xe5   :  { %143 = dma.vmem_to_hbm [thread:$0]  %s138_s21, 256, %s249_s2, [#allocation3], %s198_s29, %s198_s29, %s199_s30  }
  0xe6   :  { %195 = dma.done.wait [#allocation3], 256  }
  0xe7   :  { %196 = vsyncadd [#allocation3], 4294967040 }
  0xe8   :  { %151 = vsyncpa [#allocation3], 1 }

</bundles_post_ra>
